<compile_context>
chip_gen: v7x
topology: tpu7x:2x2x1
jax: 0.10.0
libtpu: 0.0.40
codegen_flags: <defaults>
</compile_context>

<pallas_src>
import functools

import jax
import jax.numpy as jnp
from jax.experimental import pallas as pl
from jax.experimental.pallas import tpu as pltpu

TILE = 128          # lanes per in-kernel chunk
_NEG_BIG = -1.0e30  # finite "-inf" stand-in (avoids inf-inf NaN corner cases)


def _make_cox_kernel(n, num_tiles):
    """Kernel factory; `n` (true sample count) and `num_tiles` are baked in."""

    unroll = True if num_tiles <= 16 else 8

    def kernel(s_ref, loss_ref, mean_ref):
        lane = jax.lax.broadcasted_iota(jnp.int32, (1, TILE), 1)

        def chunk_body(c, carry):
            m_prev, l_prev, acc = carry             # (1,1), (1,1), (1,TILE)
            s_row = s_ref[pl.ds(c, 1), :]           # (1, TILE)

            # In-chunk inclusive prefix scan over (m, l) logsumexp pairs:
            # 7 Hillis-Steele doubling steps; the shifted-in neutral element
            # is (m=-BIG, l=0).  The rolls ride the otherwise-idle XLU slot.
            m = s_row
            lsum = jnp.ones_like(s_row)
            for d in (1, 2, 4, 8, 16, 32, 64):
                valid = lane >= d
                m_sh = jnp.where(valid, pltpu.roll(m, shift=d, axis=1), _NEG_BIG)
                l_sh = jnp.where(valid, pltpu.roll(lsum, shift=d, axis=1), 0.0)
                m_new = jnp.maximum(m, m_sh)
                lsum = lsum * jnp.exp(m - m_new) + l_sh * jnp.exp(m_sh - m_new)
                m = m_new

            # Fold in the cross-chunk running (max, rescaled-sum) carry.
            m_prev_b = jnp.broadcast_to(m_prev, (1, TILE))
            l_prev_b = jnp.broadcast_to(l_prev, (1, TILE))
            m_run = jnp.maximum(m, m_prev_b)
            l_run = (lsum * jnp.exp(m - m_run)
                     + l_prev_b * jnp.exp(m_prev_b - m_run))

            loss_row = m_run + jnp.log(l_run) - s_row

            # PyTorch leaves loss[0] = 0; the zero-padded tail (g >= n) is
            # masked out of both the stored losses and the mean accumulator.
            g = c * TILE + lane
            loss_row = jnp.where(jnp.logical_and(g >= 1, g < n), loss_row, 0.0)

            loss_ref[pl.ds(c, 1), :] = loss_row     # lane-dense store
            acc = acc + loss_row                    # VPU accumulate

            # Next-chunk carry = lane TILE-1 of the combined prefix state
            # (no recomputation; padding only exists in the final chunk, whose
            # carry is never consumed, so the carry stays clean).
            m_next = m_run[:, TILE - 1:TILE]
            l_next = l_run[:, TILE - 1:TILE]
            return m_next, l_next, acc

        init = (jnp.full((1, 1), _NEG_BIG, jnp.float32),
                jnp.zeros((1, 1), jnp.float32),
                jnp.zeros((1, TILE), jnp.float32))
        _, _, acc = jax.lax.fori_loop(0, num_tiles, chunk_body, init,
                                      unroll=unroll)
        mean_ref[...] = jnp.sum(acc, keepdims=True) / jnp.float32(n)

    return kernel


@functools.partial(jax.jit, static_argnames=("reduction",))
def cox_loss(scores, truth, reduction=True):
    """scores: (n, 1) float; truth: (n, 2) with columns [E, T]."""
    assert scores.ndim == 2 and scores.shape[1] == 1
    assert truth.ndim == 2 and truth.shape[1] == 2
    assert truth.shape[0] == scores.shape[0]

    s = jnp.squeeze(scores, axis=1).astype(jnp.float32)          # (n,)
    times = truth[:, 1].astype(jnp.float32)
    # events = truth[:, 0]  # extracted but unused by the reference forward
    order = jnp.argsort(-times, stable=True)    # descending T, stable like sorted()
    s_sorted = s[order]

    n = s_sorted.shape[0]
    num_tiles = pl.cdiv(n, TILE)
    n_pad = num_tiles * TILE
    s_pad = jnp.pad(s_sorted, (0, n_pad - n)).reshape(num_tiles, TILE)

    loss_rows, mean_out = pl.pallas_call(
        _make_cox_kernel(n, num_tiles),
        out_shape=(
            jax.ShapeDtypeStruct((num_tiles, TILE), jnp.float32),
            jax.ShapeDtypeStruct((1, 1), jnp.float32),
        ),
        grid=(1,),
        in_specs=[pl.BlockSpec((num_tiles, TILE), lambda i: (0, 0))],
        out_specs=(
            pl.BlockSpec((num_tiles, TILE), lambda i: (0, 0)),
            pl.BlockSpec((1, 1), lambda i: (0, 0)),
        ),
        compiler_params=pltpu.CompilerParams(
            dimension_semantics=("arbitrary",),
        ),
    )(s_pad)

    if reduction == "none":
        # Per-sample losses in sorted (descending-time) order, like PyTorch.
        return loss_rows.reshape(-1)[:n]
    return mean_out[0, 0]


def _reference(scores, truth, reduction=True):
    """Pure-JAX emulation of the PyTorch forward."""
    s = jnp.squeeze(scores, axis=1).astype(jnp.float32)
    t = truth[:, 1].astype(jnp.float32)
    order = jnp.argsort(-t, stable=True)
    s_sorted = s[order]
    n = s_sorted.shape[0]
    idx = jnp.arange(n)
    mask = idx[None, :] <= idx[:, None]                 # (i, j): j <= i
    masked = jnp.where(mask, s_sorted[None, :], -jnp.inf)
    m = jnp.max(masked, axis=1)
    sums = jnp.sum(jnp.where(mask, jnp.exp(masked - m[:, None]), 0.0), axis=1)
    loss = m + jnp.log(sums) - s_sorted
    loss = loss.at[0].set(0.0)
    if reduction == "none":
        return loss
    return jnp.mean(loss)


if __name__ == "__main__":
    key = jax.random.PRNGKey(0)
    k1, k2, k3 = jax.random.split(key, 3)

    # Typical survival-analysis batch: n samples, scores (n,1), truth (n,2)=[E,T].
    n = 200  # > TILE so the cross-chunk streaming-logsumexp carry is exercised
    scores = jax.random.normal(k1, (n, 1), dtype=jnp.float32)
    events = (jax.random.uniform(k2, (n,)) > 0.5).astype(jnp.float32)
    times = jax.random.uniform(k3, (n,), minval=0.1, maxval=10.0,
                               dtype=jnp.float32)
    truth = jnp.stack([events, times], axis=1)

    # Default reduction (mean).
    loss = jax.block_until_ready(cox_loss(scores, truth))
    ref = _reference(scores, truth)
    assert jnp.allclose(loss, ref, rtol=1e-4, atol=1e-5), (loss, ref)

    # 'none' branch (per-sample losses in sorted order).
    loss_none = jax.block_until_ready(cox_loss(scores, truth, reduction="none"))
    ref_none = _reference(scores, truth, reduction="none")
    assert jnp.allclose(loss_none, ref_none, rtol=1e-4, atol=1e-4)

    # Small single-chunk batch as well.
    n2 = 16
    loss2 = jax.block_until_ready(cox_loss(scores[:n2], truth[:n2]))
    ref2 = _reference(scores[:n2], truth[:n2])
    assert jnp.allclose(loss2, ref2, rtol=1e-4, atol=1e-5), (loss2, ref2)

    print("KERNEL_OK")
</pallas_src>

<mosaic_0001>
module attributes {stable_mosaic.version = 11 : i64} {
  func.func @kernel(%arg0: i32, %arg1: memref<2x128xf32, #tpu.memory_space<vmem>>, %arg2: memref<2x128xf32, #tpu.memory_space<vmem>>, %arg3: memref<1x1xf32, #tpu.memory_space<vmem>>) attributes {dimension_semantics = [#tpu.dimension_semantics<arbitrary>], iteration_bounds = array<i64: 1>, scalar_prefetch = 0 : i64, scratch_operands = 0 : i64, tpu.core_type = #tpu.core_type<tc>, window_params = [{pipeline_mode = #tpu.pipeline_mode<synchronous>, transform_indices = @transform_0, window_bounds = array<i64: 2, 128>}, {pipeline_mode = #tpu.pipeline_mode<synchronous>, transform_indices = @transform_1, window_bounds = array<i64: 2, 128>}, {pipeline_mode = #tpu.pipeline_mode<synchronous>, transform_indices = @transform_2, window_bounds = array<i64: 1, 1>}]} {
    %0 = tpu.iota {dimensions = array<i32: 1>} : vector<1x128xi32>
    %cst = arith.constant -1.000000e+30 : f32
    %1 = vector.broadcast %cst : f32 to vector<1x1xf32>
    %cst_0 = arith.constant 0.000000e+00 : f32
    %2 = vector.broadcast %cst_0 : f32 to vector<1x1xf32>
    %cst_1 = arith.constant 0.000000e+00 : f32
    %3 = vector.broadcast %cst_1 : f32 to vector<1x128xf32>
    %c0_i32 = arith.constant 0 : i32
    %4 = arith.index_cast %c0_i32 : i32 to index
    %c0 = arith.constant 0 : index
    %5 = vector.load %arg1[%4, %c0] : memref<2x128xf32, #tpu.memory_space<vmem>>, vector<1x128xf32>
    %cst_2 = arith.constant 1.000000e+00 : f32
    %6 = vector.broadcast %cst_2 : f32 to vector<1x128xf32>
    %c1_i32 = arith.constant 1 : i32
    %7 = vector.broadcast %c1_i32 : i32 to vector<1x128xi32>
    %8 = arith.cmpi sge, %0, %7 : vector<1x128xi32>
    %c1_i32_3 = arith.constant 1 : i32
    %9 = tpu.dynamic_rotate %5 by %c1_i32_3 dim 1 : vector<1x128xf32>, i32 -> vector<1x128xf32>
    %cst_4 = arith.constant -1.000000e+30 : f32
    %10 = vector.broadcast %cst_4 : f32 to vector<1x128xf32>
    %11 = arith.select %8, %9, %10 : vector<1x128xi1>, vector<1x128xf32>
    %c1_i32_5 = arith.constant 1 : i32
    %12 = tpu.dynamic_rotate %6 by %c1_i32_5 dim 1 : vector<1x128xf32>, i32 -> vector<1x128xf32>
    %cst_6 = arith.constant 0.000000e+00 : f32
    %13 = vector.broadcast %cst_6 : f32 to vector<1x128xf32>
    %14 = arith.select %8, %12, %13 : vector<1x128xi1>, vector<1x128xf32>
    %15 = arith.maximumf %5, %11 : vector<1x128xf32>
    %16 = arith.subf %5, %15 : vector<1x128xf32>
    %17 = math.exp %16 : vector<1x128xf32>
    %18 = arith.mulf %6, %17 : vector<1x128xf32>
    %19 = arith.subf %11, %15 : vector<1x128xf32>
    %20 = math.exp %19 : vector<1x128xf32>
    %21 = arith.mulf %14, %20 : vector<1x128xf32>
    %22 = arith.addf %18, %21 : vector<1x128xf32>
    %c2_i32 = arith.constant 2 : i32
    %23 = vector.broadcast %c2_i32 : i32 to vector<1x128xi32>
    %24 = arith.cmpi sge, %0, %23 : vector<1x128xi32>
    %c2_i32_7 = arith.constant 2 : i32
    %25 = tpu.dynamic_rotate %15 by %c2_i32_7 dim 1 : vector<1x128xf32>, i32 -> vector<1x128xf32>
    %cst_8 = arith.constant -1.000000e+30 : f32
    %26 = vector.broadcast %cst_8 : f32 to vector<1x128xf32>
    %27 = arith.select %24, %25, %26 : vector<1x128xi1>, vector<1x128xf32>
    %c2_i32_9 = arith.constant 2 : i32
    %28 = tpu.dynamic_rotate %22 by %c2_i32_9 dim 1 : vector<1x128xf32>, i32 -> vector<1x128xf32>
    %cst_10 = arith.constant 0.000000e+00 : f32
    %29 = vector.broadcast %cst_10 : f32 to vector<1x128xf32>
    %30 = arith.select %24, %28, %29 : vector<1x128xi1>, vector<1x128xf32>
    %31 = arith.maximumf %15, %27 : vector<1x128xf32>
    %32 = arith.subf %15, %31 : vector<1x128xf32>
    %33 = math.exp %32 : vector<1x128xf32>
    %34 = arith.mulf %22, %33 : vector<1x128xf32>
    %35 = arith.subf %27, %31 : vector<1x128xf32>
    %36 = math.exp %35 : vector<1x128xf32>
    %37 = arith.mulf %30, %36 : vector<1x128xf32>
    %38 = arith.addf %34, %37 : vector<1x128xf32>
    %c4_i32 = arith.constant 4 : i32
    %39 = vector.broadcast %c4_i32 : i32 to vector<1x128xi32>
    %40 = arith.cmpi sge, %0, %39 : vector<1x128xi32>
    %c4_i32_11 = arith.constant 4 : i32
    %41 = tpu.dynamic_rotate %31 by %c4_i32_11 dim 1 : vector<1x128xf32>, i32 -> vector<1x128xf32>
    %cst_12 = arith.constant -1.000000e+30 : f32
    %42 = vector.broadcast %cst_12 : f32 to vector<1x128xf32>
    %43 = arith.select %40, %41, %42 : vector<1x128xi1>, vector<1x128xf32>
    %c4_i32_13 = arith.constant 4 : i32
    %44 = tpu.dynamic_rotate %38 by %c4_i32_13 dim 1 : vector<1x128xf32>, i32 -> vector<1x128xf32>
    %cst_14 = arith.constant 0.000000e+00 : f32
    %45 = vector.broadcast %cst_14 : f32 to vector<1x128xf32>
    %46 = arith.select %40, %44, %45 : vector<1x128xi1>, vector<1x128xf32>
    %47 = arith.maximumf %31, %43 : vector<1x128xf32>
    %48 = arith.subf %31, %47 : vector<1x128xf32>
    %49 = math.exp %48 : vector<1x128xf32>
    %50 = arith.mulf %38, %49 : vector<1x128xf32>
    %51 = arith.subf %43, %47 : vector<1x128xf32>
    %52 = math.exp %51 : vector<1x128xf32>
    %53 = arith.mulf %46, %52 : vector<1x128xf32>
    %54 = arith.addf %50, %53 : vector<1x128xf32>
    %c8_i32 = arith.constant 8 : i32
    %55 = vector.broadcast %c8_i32 : i32 to vector<1x128xi32>
    %56 = arith.cmpi sge, %0, %55 : vector<1x128xi32>
    %c8_i32_15 = arith.constant 8 : i32
    %57 = tpu.dynamic_rotate %47 by %c8_i32_15 dim 1 : vector<1x128xf32>, i32 -> vector<1x128xf32>
    %cst_16 = arith.constant -1.000000e+30 : f32
    %58 = vector.broadcast %cst_16 : f32 to vector<1x128xf32>
    %59 = arith.select %56, %57, %58 : vector<1x128xi1>, vector<1x128xf32>
    %c8_i32_17 = arith.constant 8 : i32
    %60 = tpu.dynamic_rotate %54 by %c8_i32_17 dim 1 : vector<1x128xf32>, i32 -> vector<1x128xf32>
    %cst_18 = arith.constant 0.000000e+00 : f32
    %61 = vector.broadcast %cst_18 : f32 to vector<1x128xf32>
    %62 = arith.select %56, %60, %61 : vector<1x128xi1>, vector<1x128xf32>
    %63 = arith.maximumf %47, %59 : vector<1x128xf32>
    %64 = arith.subf %47, %63 : vector<1x128xf32>
    %65 = math.exp %64 : vector<1x128xf32>
    %66 = arith.mulf %54, %65 : vector<1x128xf32>
    %67 = arith.subf %59, %63 : vector<1x128xf32>
    %68 = math.exp %67 : vector<1x128xf32>
    %69 = arith.mulf %62, %68 : vector<1x128xf32>
    %70 = arith.addf %66, %69 : vector<1x128xf32>
    %c16_i32 = arith.constant 16 : i32
    %71 = vector.broadcast %c16_i32 : i32 to vector<1x128xi32>
    %72 = arith.cmpi sge, %0, %71 : vector<1x128xi32>
    %c16_i32_19 = arith.constant 16 : i32
    %73 = tpu.dynamic_rotate %63 by %c16_i32_19 dim 1 : vector<1x128xf32>, i32 -> vector<1x128xf32>
    %cst_20 = arith.constant -1.000000e+30 : f32
    %74 = vector.broadcast %cst_20 : f32 to vector<1x128xf32>
    %75 = arith.select %72, %73, %74 : vector<1x128xi1>, vector<1x128xf32>
    %c16_i32_21 = arith.constant 16 : i32
    %76 = tpu.dynamic_rotate %70 by %c16_i32_21 dim 1 : vector<1x128xf32>, i32 -> vector<1x128xf32>
    %cst_22 = arith.constant 0.000000e+00 : f32
    %77 = vector.broadcast %cst_22 : f32 to vector<1x128xf32>
    %78 = arith.select %72, %76, %77 : vector<1x128xi1>, vector<1x128xf32>
    %79 = arith.maximumf %63, %75 : vector<1x128xf32>
    %80 = arith.subf %63, %79 : vector<1x128xf32>
    %81 = math.exp %80 : vector<1x128xf32>
    %82 = arith.mulf %70, %81 : vector<1x128xf32>
    %83 = arith.subf %75, %79 : vector<1x128xf32>
    %84 = math.exp %83 : vector<1x128xf32>
    %85 = arith.mulf %78, %84 : vector<1x128xf32>
    %86 = arith.addf %82, %85 : vector<1x128xf32>
    %c32_i32 = arith.constant 32 : i32
    %87 = vector.broadcast %c32_i32 : i32 to vector<1x128xi32>
    %88 = arith.cmpi sge, %0, %87 : vector<1x128xi32>
    %c32_i32_23 = arith.constant 32 : i32
    %89 = tpu.dynamic_rotate %79 by %c32_i32_23 dim 1 : vector<1x128xf32>, i32 -> vector<1x128xf32>
    %cst_24 = arith.constant -1.000000e+30 : f32
    %90 = vector.broadcast %cst_24 : f32 to vector<1x128xf32>
    %91 = arith.select %88, %89, %90 : vector<1x128xi1>, vector<1x128xf32>
    %c32_i32_25 = arith.constant 32 : i32
    %92 = tpu.dynamic_rotate %86 by %c32_i32_25 dim 1 : vector<1x128xf32>, i32 -> vector<1x128xf32>
    %cst_26 = arith.constant 0.000000e+00 : f32
    %93 = vector.broadcast %cst_26 : f32 to vector<1x128xf32>
    %94 = arith.select %88, %92, %93 : vector<1x128xi1>, vector<1x128xf32>
    %95 = arith.maximumf %79, %91 : vector<1x128xf32>
    %96 = arith.subf %79, %95 : vector<1x128xf32>
    %97 = math.exp %96 : vector<1x128xf32>
    %98 = arith.mulf %86, %97 : vector<1x128xf32>
    %99 = arith.subf %91, %95 : vector<1x128xf32>
    %100 = math.exp %99 : vector<1x128xf32>
    %101 = arith.mulf %94, %100 : vector<1x128xf32>
    %102 = arith.addf %98, %101 : vector<1x128xf32>
    %c64_i32 = arith.constant 64 : i32
    %103 = vector.broadcast %c64_i32 : i32 to vector<1x128xi32>
    %104 = arith.cmpi sge, %0, %103 : vector<1x128xi32>
    %c64_i32_27 = arith.constant 64 : i32
    %105 = tpu.dynamic_rotate %95 by %c64_i32_27 dim 1 : vector<1x128xf32>, i32 -> vector<1x128xf32>
    %cst_28 = arith.constant -1.000000e+30 : f32
    %106 = vector.broadcast %cst_28 : f32 to vector<1x128xf32>
    %107 = arith.select %104, %105, %106 : vector<1x128xi1>, vector<1x128xf32>
    %c64_i32_29 = arith.constant 64 : i32
    %108 = tpu.dynamic_rotate %102 by %c64_i32_29 dim 1 : vector<1x128xf32>, i32 -> vector<1x128xf32>
    %cst_30 = arith.constant 0.000000e+00 : f32
    %109 = vector.broadcast %cst_30 : f32 to vector<1x128xf32>
    %110 = arith.select %104, %108, %109 : vector<1x128xi1>, vector<1x128xf32>
    %111 = arith.maximumf %95, %107 : vector<1x128xf32>
    %112 = arith.subf %95, %111 : vector<1x128xf32>
    %113 = math.exp %112 : vector<1x128xf32>
    %114 = arith.mulf %102, %113 : vector<1x128xf32>
    %115 = arith.subf %107, %111 : vector<1x128xf32>
    %116 = math.exp %115 : vector<1x128xf32>
    %117 = arith.mulf %110, %116 : vector<1x128xf32>
    %118 = arith.addf %114, %117 : vector<1x128xf32>
    %119 = vector.shape_cast %1 : vector<1x1xf32> to vector<1x1xf32>
    %120 = vector.broadcast %119 : vector<1x1xf32> to vector<1x128xf32>
    %121 = vector.shape_cast %2 : vector<1x1xf32> to vector<1x1xf32>
    %122 = vector.broadcast %121 : vector<1x1xf32> to vector<1x128xf32>
    %123 = arith.maximumf %111, %120 : vector<1x128xf32>
    %124 = arith.subf %111, %123 : vector<1x128xf32>
    %125 = math.exp %124 : vector<1x128xf32>
    %126 = arith.mulf %118, %125 : vector<1x128xf32>
    %127 = arith.subf %120, %123 : vector<1x128xf32>
    %128 = math.exp %127 : vector<1x128xf32>
    %129 = arith.mulf %122, %128 : vector<1x128xf32>
    %130 = arith.addf %126, %129 : vector<1x128xf32>
    %131 = math.log %130 : vector<1x128xf32>
    %132 = arith.addf %123, %131 : vector<1x128xf32>
    %133 = arith.subf %132, %5 : vector<1x128xf32>
    %c128_i32 = arith.constant 128 : i32
    %134 = arith.muli %c0_i32, %c128_i32 : i32
    %135 = vector.broadcast %134 : i32 to vector<1x128xi32>
    %136 = arith.addi %135, %0 : vector<1x128xi32>
    %c1_i32_31 = arith.constant 1 : i32
    %137 = vector.broadcast %c1_i32_31 : i32 to vector<1x128xi32>
    %138 = arith.cmpi sge, %136, %137 : vector<1x128xi32>
    %c200_i32 = arith.constant 200 : i32
    %139 = vector.broadcast %c200_i32 : i32 to vector<1x128xi32>
    %140 = arith.cmpi slt, %136, %139 : vector<1x128xi32>
    %141 = arith.andi %138, %140 : vector<1x128xi1>
    %cst_32 = arith.constant 0.000000e+00 : f32
    %142 = vector.broadcast %cst_32 : f32 to vector<1x128xf32>
    %143 = arith.select %141, %133, %142 : vector<1x128xi1>, vector<1x128xf32>
    %144 = arith.index_cast %c0_i32 : i32 to index
    %c0_33 = arith.constant 0 : index
    %145 = vector.load %arg2[%144, %c0_33] : memref<2x128xf32, #tpu.memory_space<vmem>>, vector<1x128xf32>
    tpu.vector_store %arg2[%144, %c0_33], %143 {strides = array<i32>} : memref<2x128xf32, #tpu.memory_space<vmem>>, vector<1x128xf32>,
    %146 = arith.addf %3, %143 : vector<1x128xf32>
    %147 = vector.extract_strided_slice %123 {offsets = [0, 127], sizes = [1, 1], strides = [1, 1]} : vector<1x128xf32> to vector<1x1xf32>
    %148 = vector.extract_strided_slice %130 {offsets = [0, 127], sizes = [1, 1], strides = [1, 1]} : vector<1x128xf32> to vector<1x1xf32>
    %c1_i32_34 = arith.constant 1 : i32
    %149 = arith.index_cast %c1_i32_34 : i32 to index
    %c0_35 = arith.constant 0 : index
    %150 = vector.load %arg1[%149, %c0_35] : memref<2x128xf32, #tpu.memory_space<vmem>>, vector<1x128xf32>
    %cst_36 = arith.constant 1.000000e+00 : f32
    %151 = vector.broadcast %cst_36 : f32 to vector<1x128xf32>
    %c1_i32_37 = arith.constant 1 : i32
    %152 = vector.broadcast %c1_i32_37 : i32 to vector<1x128xi32>
    %153 = arith.cmpi sge, %0, %152 : vector<1x128xi32>
    %c1_i32_38 = arith.constant 1 : i32
    %154 = tpu.dynamic_rotate %150 by %c1_i32_38 dim 1 : vector<1x128xf32>, i32 -> vector<1x128xf32>
    %cst_39 = arith.constant -1.000000e+30 : f32
    %155 = vector.broadcast %cst_39 : f32 to vector<1x128xf32>
    %156 = arith.select %153, %154, %155 : vector<1x128xi1>, vector<1x128xf32>
    %c1_i32_40 = arith.constant 1 : i32
    %157 = tpu.dynamic_rotate %151 by %c1_i32_40 dim 1 : vector<1x128xf32>, i32 -> vector<1x128xf32>
    %cst_41 = arith.constant 0.000000e+00 : f32
    %158 = vector.broadcast %cst_41 : f32 to vector<1x128xf32>
    %159 = arith.select %153, %157, %158 : vector<1x128xi1>, vector<1x128xf32>
    %160 = arith.maximumf %150, %156 : vector<1x128xf32>
    %161 = arith.subf %150, %160 : vector<1x128xf32>
    %162 = math.exp %161 : vector<1x128xf32>
    %163 = arith.mulf %151, %162 : vector<1x128xf32>
    %164 = arith.subf %156, %160 : vector<1x128xf32>
    %165 = math.exp %164 : vector<1x128xf32>
    %166 = arith.mulf %159, %165 : vector<1x128xf32>
    %167 = arith.addf %163, %166 : vector<1x128xf32>
    %c2_i32_42 = arith.constant 2 : i32
    %168 = vector.broadcast %c2_i32_42 : i32 to vector<1x128xi32>
    %169 = arith.cmpi sge, %0, %168 : vector<1x128xi32>
    %c2_i32_43 = arith.constant 2 : i32
    %170 = tpu.dynamic_rotate %160 by %c2_i32_43 dim 1 : vector<1x128xf32>, i32 -> vector<1x128xf32>
    %cst_44 = arith.constant -1.000000e+30 : f32
    %171 = vector.broadcast %cst_44 : f32 to vector<1x128xf32>
    %172 = arith.select %169, %170, %171 : vector<1x128xi1>, vector<1x128xf32>
    %c2_i32_45 = arith.constant 2 : i32
    %173 = tpu.dynamic_rotate %167 by %c2_i32_45 dim 1 : vector<1x128xf32>, i32 -> vector<1x128xf32>
    %cst_46 = arith.constant 0.000000e+00 : f32
    %174 = vector.broadcast %cst_46 : f32 to vector<1x128xf32>
    %175 = arith.select %169, %173, %174 : vector<1x128xi1>, vector<1x128xf32>
    %176 = arith.maximumf %160, %172 : vector<1x128xf32>
    %177 = arith.subf %160, %176 : vector<1x128xf32>
    %178 = math.exp %177 : vector<1x128xf32>
    %179 = arith.mulf %167, %178 : vector<1x128xf32>
    %180 = arith.subf %172, %176 : vector<1x128xf32>
    %181 = math.exp %180 : vector<1x128xf32>
    %182 = arith.mulf %175, %181 : vector<1x128xf32>
    %183 = arith.addf %179, %182 : vector<1x128xf32>
    %c4_i32_47 = arith.constant 4 : i32
    %184 = vector.broadcast %c4_i32_47 : i32 to vector<1x128xi32>
    %185 = arith.cmpi sge, %0, %184 : vector<1x128xi32>
    %c4_i32_48 = arith.constant 4 : i32
    %186 = tpu.dynamic_rotate %176 by %c4_i32_48 dim 1 : vector<1x128xf32>, i32 -> vector<1x128xf32>
    %cst_49 = arith.constant -1.000000e+30 : f32
    %187 = vector.broadcast %cst_49 : f32 to vector<1x128xf32>
    %188 = arith.select %185, %186, %187 : vector<1x128xi1>, vector<1x128xf32>
    %c4_i32_50 = arith.constant 4 : i32
    %189 = tpu.dynamic_rotate %183 by %c4_i32_50 dim 1 : vector<1x128xf32>, i32 -> vector<1x128xf32>
    %cst_51 = arith.constant 0.000000e+00 : f32
    %190 = vector.broadcast %cst_51 : f32 to vector<1x128xf32>
    %191 = arith.select %185, %189, %190 : vector<1x128xi1>, vector<1x128xf32>
    %192 = arith.maximumf %176, %188 : vector<1x128xf32>
    %193 = arith.subf %176, %192 : vector<1x128xf32>
    %194 = math.exp %193 : vector<1x128xf32>
    %195 = arith.mulf %183, %194 : vector<1x128xf32>
    %196 = arith.subf %188, %192 : vector<1x128xf32>
    %197 = math.exp %196 : vector<1x128xf32>
    %198 = arith.mulf %191, %197 : vector<1x128xf32>
    %199 = arith.addf %195, %198 : vector<1x128xf32>
    %c8_i32_52 = arith.constant 8 : i32
    %200 = vector.broadcast %c8_i32_52 : i32 to vector<1x128xi32>
    %201 = arith.cmpi sge, %0, %200 : vector<1x128xi32>
    %c8_i32_53 = arith.constant 8 : i32
    %202 = tpu.dynamic_rotate %192 by %c8_i32_53 dim 1 : vector<1x128xf32>, i32 -> vector<1x128xf32>
    %cst_54 = arith.constant -1.000000e+30 : f32
    %203 = vector.broadcast %cst_54 : f32 to vector<1x128xf32>
    %204 = arith.select %201, %202, %203 : vector<1x128xi1>, vector<1x128xf32>
    %c8_i32_55 = arith.constant 8 : i32
    %205 = tpu.dynamic_rotate %199 by %c8_i32_55 dim 1 : vector<1x128xf32>, i32 -> vector<1x128xf32>
    %cst_56 = arith.constant 0.000000e+00 : f32
    %206 = vector.broadcast %cst_56 : f32 to vector<1x128xf32>
    %207 = arith.select %201, %205, %206 : vector<1x128xi1>, vector<1x128xf32>
    %208 = arith.maximumf %192, %204 : vector<1x128xf32>
    %209 = arith.subf %192, %208 : vector<1x128xf32>
    %210 = math.exp %209 : vector<1x128xf32>
    %211 = arith.mulf %199, %210 : vector<1x128xf32>
    %212 = arith.subf %204, %208 : vector<1x128xf32>
    %213 = math.exp %212 : vector<1x128xf32>
    %214 = arith.mulf %207, %213 : vector<1x128xf32>
    %215 = arith.addf %211, %214 : vector<1x128xf32>
    %c16_i32_57 = arith.constant 16 : i32
    %216 = vector.broadcast %c16_i32_57 : i32 to vector<1x128xi32>
    %217 = arith.cmpi sge, %0, %216 : vector<1x128xi32>
    %c16_i32_58 = arith.constant 16 : i32
    %218 = tpu.dynamic_rotate %208 by %c16_i32_58 dim 1 : vector<1x128xf32>, i32 -> vector<1x128xf32>
    %cst_59 = arith.constant -1.000000e+30 : f32
    %219 = vector.broadcast %cst_59 : f32 to vector<1x128xf32>
    %220 = arith.select %217, %218, %219 : vector<1x128xi1>, vector<1x128xf32>
    %c16_i32_60 = arith.constant 16 : i32
    %221 = tpu.dynamic_rotate %215 by %c16_i32_60 dim 1 : vector<1x128xf32>, i32 -> vector<1x128xf32>
    %cst_61 = arith.constant 0.000000e+00 : f32
    %222 = vector.broadcast %cst_61 : f32 to vector<1x128xf32>
    %223 = arith.select %217, %221, %222 : vector<1x128xi1>, vector<1x128xf32>
    %224 = arith.maximumf %208, %220 : vector<1x128xf32>
    %225 = arith.subf %208, %224 : vector<1x128xf32>
    %226 = math.exp %225 : vector<1x128xf32>
    %227 = arith.mulf %215, %226 : vector<1x128xf32>
    %228 = arith.subf %220, %224 : vector<1x128xf32>
    %229 = math.exp %228 : vector<1x128xf32>
    %230 = arith.mulf %223, %229 : vector<1x128xf32>
    %231 = arith.addf %227, %230 : vector<1x128xf32>
    %c32_i32_62 = arith.constant 32 : i32
    %232 = vector.broadcast %c32_i32_62 : i32 to vector<1x128xi32>
    %233 = arith.cmpi sge, %0, %232 : vector<1x128xi32>
    %c32_i32_63 = arith.constant 32 : i32
    %234 = tpu.dynamic_rotate %224 by %c32_i32_63 dim 1 : vector<1x128xf32>, i32 -> vector<1x128xf32>
    %cst_64 = arith.constant -1.000000e+30 : f32
    %235 = vector.broadcast %cst_64 : f32 to vector<1x128xf32>
    %236 = arith.select %233, %234, %235 : vector<1x128xi1>, vector<1x128xf32>
    %c32_i32_65 = arith.constant 32 : i32
    %237 = tpu.dynamic_rotate %231 by %c32_i32_65 dim 1 : vector<1x128xf32>, i32 -> vector<1x128xf32>
    %cst_66 = arith.constant 0.000000e+00 : f32
    %238 = vector.broadcast %cst_66 : f32 to vector<1x128xf32>
    %239 = arith.select %233, %237, %238 : vector<1x128xi1>, vector<1x128xf32>
    %240 = arith.maximumf %224, %236 : vector<1x128xf32>
    %241 = arith.subf %224, %240 : vector<1x128xf32>
    %242 = math.exp %241 : vector<1x128xf32>
    %243 = arith.mulf %231, %242 : vector<1x128xf32>
    %244 = arith.subf %236, %240 : vector<1x128xf32>
    %245 = math.exp %244 : vector<1x128xf32>
    %246 = arith.mulf %239, %245 : vector<1x128xf32>
    %247 = arith.addf %243, %246 : vector<1x128xf32>
    %c64_i32_67 = arith.constant 64 : i32
    %248 = vector.broadcast %c64_i32_67 : i32 to vector<1x128xi32>
    %249 = arith.cmpi sge, %0, %248 : vector<1x128xi32>
    %c64_i32_68 = arith.constant 64 : i32
    %250 = tpu.dynamic_rotate %240 by %c64_i32_68 dim 1 : vector<1x128xf32>, i32 -> vector<1x128xf32>
    %cst_69 = arith.constant -1.000000e+30 : f32
    %251 = vector.broadcast %cst_69 : f32 to vector<1x128xf32>
    %252 = arith.select %249, %250, %251 : vector<1x128xi1>, vector<1x128xf32>
    %c64_i32_70 = arith.constant 64 : i32
    %253 = tpu.dynamic_rotate %247 by %c64_i32_70 dim 1 : vector<1x128xf32>, i32 -> vector<1x128xf32>
    %cst_71 = arith.constant 0.000000e+00 : f32
    %254 = vector.broadcast %cst_71 : f32 to vector<1x128xf32>
    %255 = arith.select %249, %253, %254 : vector<1x128xi1>, vector<1x128xf32>
    %256 = arith.maximumf %240, %252 : vector<1x128xf32>
    %257 = arith.subf %240, %256 : vector<1x128xf32>
    %258 = math.exp %257 : vector<1x128xf32>
    %259 = arith.mulf %247, %258 : vector<1x128xf32>
    %260 = arith.subf %252, %256 : vector<1x128xf32>
    %261 = math.exp %260 : vector<1x128xf32>
    %262 = arith.mulf %255, %261 : vector<1x128xf32>
    %263 = arith.addf %259, %262 : vector<1x128xf32>
    %264 = vector.shape_cast %147 : vector<1x1xf32> to vector<1x1xf32>
    %265 = vector.broadcast %264 : vector<1x1xf32> to vector<1x128xf32>
    %266 = vector.shape_cast %148 : vector<1x1xf32> to vector<1x1xf32>
    %267 = vector.broadcast %266 : vector<1x1xf32> to vector<1x128xf32>
    %268 = arith.maximumf %256, %265 : vector<1x128xf32>
    %269 = arith.subf %256, %268 : vector<1x128xf32>
    %270 = math.exp %269 : vector<1x128xf32>
    %271 = arith.mulf %263, %270 : vector<1x128xf32>
    %272 = arith.subf %265, %268 : vector<1x128xf32>
    %273 = math.exp %272 : vector<1x128xf32>
    %274 = arith.mulf %267, %273 : vector<1x128xf32>
    %275 = arith.addf %271, %274 : vector<1x128xf32>
    %276 = math.log %275 : vector<1x128xf32>
    %277 = arith.addf %268, %276 : vector<1x128xf32>
    %278 = arith.subf %277, %150 : vector<1x128xf32>
    %c128_i32_72 = arith.constant 128 : i32
    %279 = arith.muli %c1_i32_34, %c128_i32_72 : i32
    %280 = vector.broadcast %279 : i32 to vector<1x128xi32>
    %281 = arith.addi %280, %0 : vector<1x128xi32>
    %c1_i32_73 = arith.constant 1 : i32
    %282 = vector.broadcast %c1_i32_73 : i32 to vector<1x128xi32>
    %283 = arith.cmpi sge, %281, %282 : vector<1x128xi32>
    %c200_i32_74 = arith.constant 200 : i32
    %284 = vector.broadcast %c200_i32_74 : i32 to vector<1x128xi32>
    %285 = arith.cmpi slt, %281, %284 : vector<1x128xi32>
    %286 = arith.andi %283, %285 : vector<1x128xi1>
    %cst_75 = arith.constant 0.000000e+00 : f32
    %287 = vector.broadcast %cst_75 : f32 to vector<1x128xf32>
    %288 = arith.select %286, %278, %287 : vector<1x128xi1>, vector<1x128xf32>
    %289 = arith.index_cast %c1_i32_34 : i32 to index
    %c0_76 = arith.constant 0 : index
    %290 = vector.load %arg2[%289, %c0_76] : memref<2x128xf32, #tpu.memory_space<vmem>>, vector<1x128xf32>
    tpu.vector_store %arg2[%289, %c0_76], %288 {strides = array<i32>} : memref<2x128xf32, #tpu.memory_space<vmem>>, vector<1x128xf32>,
    %291 = arith.addf %146, %288 : vector<1x128xf32>
    %292 = vector.extract_strided_slice %268 {offsets = [0, 127], sizes = [1, 1], strides = [1, 1]} : vector<1x128xf32> to vector<1x1xf32>
    %293 = vector.extract_strided_slice %275 {offsets = [0, 127], sizes = [1, 1], strides = [1, 1]} : vector<1x128xf32> to vector<1x1xf32>
    %c2_i32_77 = arith.constant 2 : i32
    %294 = vector.shape_cast %291 : vector<1x128xf32> to vector<1x1x128xf32>
    %cst_78 = arith.constant dense<0.000000e+00> : vector<1xf32>
    %295 = vector.multi_reduction <add>, %294, %cst_78 [1, 2] : vector<1x1x128xf32> to vector<1xf32>
    %296 = vector.shape_cast %295 : vector<1xf32> to vector<1x1x1xf32>
    %297 = vector.extract %296[0, 0, 0] : f32 from vector<1x1x1xf32>
    %298 = vector.broadcast %297 : f32 to vector<1x1xf32>
    %cst_79 = arith.constant 2.000000e+02 : f32
    %299 = vector.broadcast %cst_79 : f32 to vector<1x1xf32>
    %300 = arith.divf %298, %299 : vector<1x1xf32>
    %c0_80 = arith.constant 0 : index
    %c0_81 = arith.constant 0 : index
    %301 = vector.load %arg3[%c0_80, %c0_81] : memref<1x1xf32, #tpu.memory_space<vmem>>, vector<1x1xf32>
    tpu.vector_store %arg3[%c0_80, %c0_81], %300 {strides = array<i32>} : memref<1x1xf32, #tpu.memory_space<vmem>>, vector<1x1xf32>,
    return
  }
  func.func @transform_0(%arg0: i32) -> (i32, i32) {
    %c0_i32 = arith.constant 0 : i32
    %c0_i32_0 = arith.constant 0 : i32
    %c0_i32_1 = arith.constant 0 : i32
    return %c0_i32, %c0_i32_0 : i32, i32
  }
  func.func @transform_1(%arg0: i32) -> (i32, i32) {
    %c0_i32 = arith.constant 0 : i32
    %c0_i32_0 = arith.constant 0 : i32
    %c0_i32_1 = arith.constant 0 : i32
    return %c0_i32, %c0_i32_0 : i32, i32
  }
  func.func @transform_2(%arg0: i32) -> (i32, i32) {
    %c0_i32 = arith.constant 0 : i32
    %c0_i32_0 = arith.constant 0 : i32
    %c0_i32_1 = arith.constant 0 : i32
    return %c0_i32, %c0_i32_0 : i32, i32
  }
}

</mosaic_0001>

<bundles_post_ra>
// kernel: cox_loss.1
= control target key start
LH: loop header
LB: loop body
LE: loop exit
PB: predicated region body
PF: predicated region fallthrough
CT: control target
= control target key end

     0   :  { %8 = vsyncpa [#allocation3], 0  ;;  %s467_s11 = smov 1   ;;  %s625_s0 = inlined_call_operand.vmem [shape: f32[2,128], index: 0, kind: input, shape index: {}]   ;;  %s626_s1 = inlined_call_operand.hbm [shape: f32[2,128], index: 1, kind: output, shape index: {0}]   ;;  %s627_s2 = inlined_call_operand.hbm [shape: f32[1,1], index: 2, kind: output, shape index: {1}]  }
   0x1   :  { %v496_v0 = vld [vmem:[%s625_s0] sm:$0x1] }
   0x2   :  { %16 = vrot.lane.b32.xlu0 %v496_v0, %s467_s11 }
   0x3   :  { %9 = vsyncpa [#allocation5], 0  ;;  %v468_v1 = vmov 1.0   ;;  %v12_v2 = vlaneseq  ;;  %s469_s12 = smov 2   ;;  %v510_v9 = vld [vmem:[%s625_s0 + $0x1] sm:$0x1] }
   0x4   :  { %s470_s0 = smov 4   ;;  %s471_s15 = smov 8   ;;  %vm292_vm8 = vcmask 1040384  }
   0x5   :  { %v499_v3 = vand.u32 127, %v12_v2  ;;  %s472_s16 = smov 16   ;;  %s473_s17 = smov 32  }
   0x6   :  { %19 = vrot.lane.b32.xlu0 %v468_v1, %s467_s11  ;;  %s475_s18 = smov 64   ;;  %s476_s19 = smov [#allocation2]  }
   0x7   :  { %vm15_vm0 = vcmp.ge.s32.totalorder %v499_v3, 1  ;;  %vm31_vm1 = vcmp.ge.s32.totalorder %v499_v3, 2  ;;  %vm48_vm2 = vcmp.ge.s32.totalorder %v499_v3, 4  ;;  %vm65_vm3 = vcmp.ge.s32.totalorder %v499_v3, 8  ;;  %s314_s20 = sshll.u32 %s476_s19, 4  ;;  %s315_s20 = int_to_ptr.vmem [resolvable:$true] %s314_s20 }
   0x8   :  { %vm82_vm4 = vcmp.ge.s32.totalorder %v499_v3, 16  ;;  %vm99_vm5 = vcmp.ge.s32.totalorder %v499_v3, 32  ;;  %vm116_vm6 = vcmp.ge.s32.totalorder %v499_v3, 64  ;;  %s419_s21 = scalar_lea.vmem %s315_s20, 32  ;;  %p424_p1 = scmp.lt.s32.totalorder %s315_s20, %s315_s20 }
   0x9   :  { %p420_p0 = scmp.ne.s32.totalorder %s315_s20, %s419_s21  ;;  %p425_p2 = scmp.lt.s32.totalorder %s419_s21, %s419_s21 }
   0xb   :  { %p426_p3 = por %p425_p2, %p424_p1 }
   0xd   :  { %p427_p4 = pnand %p426_p3, %p420_p0 }
  0x74   :  { %v17_v4 = vpop.permute.xlu0 %16 }
  0x75   :  { %v18_v5 = vsel %vm15_vm0, %v17_v4, -1e+30 }
  0x76   :  { %v22_v6 = vmax.f32 %v496_v0, %v18_v5 }
  0x78   :  { %v23_v7 = vsub.f32 %v496_v0, %v22_v6  ;;  %v26_v8 = vsub.f32 %v18_v5, %v22_v6  ;;  %32 = vrot.lane.b32.xlu1 %v22_v6, %s469_s12  ;;  %v20_v12 = vpop.permute.xlu0 %19 }
  0x79   :  { %v21_v13 = vsel %vm15_vm0, %v20_v12, 0.0 }
  0x7a   :  { %v24_v10 = vmul.f32 1.442695, %v23_v7  ;;  %v27_v11 = vmul.f32 1.442695, %v26_v8 }
  0x7c   :  { %351 = vpow2.f32 %v27_v11  ;;  %153 = vrot.lane.b32.xlu1 %v510_v9, %s467_s11 }
  0x7d   :  { %353 = vpow2.f32 %v24_v10 }
  0x86   :  { %v352_v14 = vpop.eup %351 }
  0x87   :  { %v29_v15 = vmul.f32 %v352_v14, %v21_v13  ;;  %v354_v16 = vpop.eup %353 }
  0x89   :  { %v30_v17 = vadd.f32 %v354_v16, %v29_v15 }
  0x8b   :  { %35 = vrot.lane.b32.xlu0 %v30_v17, %s469_s12 }
  0xea   :  { %v33_v18 = vpop.permute.xlu1 %32 }
  0xeb   :  { %v34_v19 = vsel %vm31_vm1, %v33_v18, -1e+30 }
  0xec   :  { %v38_v20 = vmax.f32 %v22_v6, %v34_v19 }
  0xee   :  { %v39_v21 = vsub.f32 %v22_v6, %v38_v20  ;;  %v43_v22 = vsub.f32 %v34_v19, %v38_v20  ;;  %49 = vrot.lane.b32.xlu1 %v38_v20, %s470_s0  ;;  %v154_v23 = vpop.permute.xlu1 %153 }
  0xef   :  { %v155_v24 = vsel %vm15_vm0, %v154_v23, -1e+30 }
  0xf0   :  { %v40_v25 = vmul.f32 1.442695, %v39_v21  ;;  %v44_v26 = vmul.f32 1.442695, %v43_v22  ;;  %v156_v27 = vmax.f32 %v510_v9, %v155_v24 }
  0xf2   :  { %355 = vpow2.f32 %v40_v25  ;;  %v157_v28 = vsub.f32 %v510_v9, %v156_v27  ;;  %v160_v29 = vsub.f32 %v155_v24, %v156_v27  ;;  %165 = vrot.lane.b32.xlu0 %v156_v27, %s469_s12 }
  0xf3   :  { %357 = vpow2.f32 %v44_v26 }
  0xf4   :  { %v158_v30 = vmul.f32 1.442695, %v157_v28  ;;  %v161_v31 = vmul.f32 1.442695, %v160_v29 }
  0xf6   :  { %359 = vpow2.f32 %v161_v31 }
  0xf7   :  { %361 = vpow2.f32 %v158_v30 }
  0xfc   :  { %v356_v32 = vpop.eup %355 }
  0xfd   :  { %v36_v33 = vpop.permute.xlu0 %35  ;;  %v358_v34 = vpop.eup %357  ;;  %v42_v36 = vmul.f32 %v356_v32, %v30_v17 }
  0xfe   :  { %v37_v35 = vsel %vm31_vm1, %v36_v33, 0.0 }
  0xff   :  { %v46_v37 = vmul.f32 %v358_v34, %v37_v35 }
 0x100   :  { %v360_v38 = vpop.eup %359 }
 0x101   :  { %v362_v39 = vpop.eup %361  ;;  %v47_v40 = vadd.f32 %v46_v37, %v42_v36  ;;  %v163_v41 = vmul.f32 %v360_v38, %v21_v13 }
 0x103   :  { %52 = vrot.lane.b32.xlu1 %v47_v40, %s470_s0  ;;  %v164_v42 = vadd.f32 %v362_v39, %v163_v41 }
 0x105   :  { %168 = vrot.lane.b32.xlu0 %v164_v42, %s469_s12 }
 0x160   :  { %v50_v43 = vpop.permute.xlu1 %49 }
 0x161   :  { %v51_v44 = vsel %vm48_vm2, %v50_v43, -1e+30 }
 0x162   :  { %v55_v45 = vmax.f32 %v38_v20, %v51_v44 }
 0x164   :  { %v56_v46 = vsub.f32 %v38_v20, %v55_v45  ;;  %v60_v47 = vsub.f32 %v51_v44, %v55_v45  ;;  %v166_v48 = vpop.permute.xlu0 %165  ;;  %66 = vrot.lane.b32.xlu1 %v55_v45, %s471_s15 }
 0x165   :  { %v167_v49 = vsel %vm31_vm1, %v166_v48, -1e+30 }
 0x166   :  { %v57_v50 = vmul.f32 1.442695, %v56_v46  ;;  %v171_v51 = vmax.f32 %v156_v27, %v167_v49  ;;  %v61_v52 = vmul.f32 1.442695, %v60_v47 }
 0x168   :  { %v172_v53 = vsub.f32 %v156_v27, %v171_v51  ;;  %v176_v54 = vsub.f32 %v167_v49, %v171_v51  ;;  %181 = vrot.lane.b32.xlu0 %v171_v51, %s470_s0  ;;  %363 = vpow2.f32 %v57_v50 }
 0x169   :  { %365 = vpow2.f32 %v61_v52 }
 0x16a   :  { %v173_v55 = vmul.f32 1.442695, %v172_v53  ;;  %v177_v56 = vmul.f32 1.442695, %v176_v54 }
 0x16c   :  { %367 = vpow2.f32 %v173_v55 }
 0x16d   :  { %369 = vpow2.f32 %v177_v56 }
 0x172   :  { %v364_v57 = vpop.eup %363 }
 0x173   :  { %v366_v58 = vpop.eup %365  ;;  %v59_v62 = vmul.f32 %v364_v57, %v47_v40 }
 0x175   :  { %v53_v59 = vpop.permute.xlu1 %52 }
 0x176   :  { %v368_v60 = vpop.eup %367  ;;  %v54_v61 = vsel %vm48_vm2, %v53_v59, 0.0 }
 0x177   :  { %v63_v63 = vmul.f32 %v366_v58, %v54_v61  ;;  %v169_v1 = vpop.permute.xlu0 %168  ;;  %v370_v2 = vpop.eup %369  ;;  %v175_v6 = vmul.f32 %v368_v60, %v164_v42 }
 0x178   :  { %v170_v4 = vsel %vm31_vm1, %v169_v1, 0.0 }
 0x179   :  { %v64_v5 = vadd.f32 %v63_v63, %v59_v62  ;;  %v179_v7 = vmul.f32 %v370_v2, %v170_v4  ;;  %v474_v4 = vmov 127  }
 0x17a   :  { %349 = vset.pattern.permute.xlu1 %v474_v4  ;;  %350 = vset.pattern.permute.xlu0 %v474_v4 }
 0x17b   :  { %v180_v8 = vadd.f32 %v179_v7, %v175_v6  ;;  %69 = vrot.lane.b32.xlu1 %v64_v5, %s471_s15 }
 0x17d   :  { %184 = vrot.lane.b32.xlu0 %v180_v8, %s470_s0 }
 0x1d6   :  { %v67_v10 = vpop.permute.xlu1 %66 }
 0x1d7   :  { %v68_v11 = vsel %vm65_vm3, %v67_v10, -1e+30 }
 0x1d8   :  { %v72_v12 = vmax.f32 %v55_v45, %v68_v11 }
 0x1da   :  { %v73_v13 = vsub.f32 %v55_v45, %v72_v12  ;;  %v182_v14 = vpop.permute.xlu0 %181  ;;  %83 = vrot.lane.b32.xlu1 %v72_v12, %s472_s16  ;;  %v77_v15 = vsub.f32 %v68_v11, %v72_v12 }
 0x1db   :  { %v183_v16 = vsel %vm48_vm2, %v182_v14, -1e+30 }
 0x1dc   :  { %v187_v17 = vmax.f32 %v171_v51, %v183_v16  ;;  %v74_v18 = vmul.f32 1.442695, %v73_v13  ;;  %v78_v21 = vmul.f32 1.442695, %v77_v15 }
 0x1de   :  { %v188_v19 = vsub.f32 %v171_v51, %v187_v17  ;;  %v192_v20 = vsub.f32 %v183_v16, %v187_v17  ;;  %197 = vrot.lane.b32.xlu0 %v187_v17, %s471_s15  ;;  %371 = vpow2.f32 %v74_v18 }
 0x1df   :  { %373 = vpow2.f32 %v78_v21 }
 0x1e0   :  { %v189_v22 = vmul.f32 1.442695, %v188_v19  ;;  %v193_v23 = vmul.f32 1.442695, %v192_v20 }
 0x1e2   :  { %375 = vpow2.f32 %v189_v22 }
 0x1e3   :  { %377 = vpow2.f32 %v193_v23 }
 0x1e8   :  { %v372_v24 = vpop.eup %371 }
 0x1e9   :  { %v374_v25 = vpop.eup %373  ;;  %v76_v29 = vmul.f32 %v372_v24, %v64_v5 }
 0x1ec   :  { %v376_v27 = vpop.eup %375 }
 0x1ed   :  { %v70_v26 = vpop.permute.xlu1 %69  ;;  %v378_v32 = vpop.eup %377  ;;  %v191_v35 = vmul.f32 %v376_v27, %v180_v8 }
 0x1ee   :  { %v71_v28 = vsel %vm65_vm3, %v70_v26, 0.0 }
 0x1ef   :  { %v80_v30 = vmul.f32 %v374_v25, %v71_v28  ;;  %v185_v31 = vpop.permute.xlu0 %184 }
 0x1f0   :  { %v186_v33 = vsel %vm48_vm2, %v185_v31, 0.0 }
 0x1f1   :  { %v81_v34 = vadd.f32 %v80_v30, %v76_v29  ;;  %v195_v36 = vmul.f32 %v378_v32, %v186_v33 }
 0x1f3   :  { %v196_v37 = vadd.f32 %v195_v36, %v191_v35  ;;  %86 = vrot.lane.b32.xlu1 %v81_v34, %s472_s16 }
 0x1f5   :  { %200 = vrot.lane.b32.xlu0 %v196_v37, %s471_s15 }
 0x24c   :  { %v84_v38 = vpop.permute.xlu1 %83 }
 0x24d   :  { %v85_v39 = vsel %vm82_vm4, %v84_v38, -1e+30 }
 0x24e   :  { %v89_v40 = vmax.f32 %v72_v12, %v85_v39 }
 0x250   :  { %v198_v41 = vpop.permute.xlu0 %197  ;;  %100 = vrot.lane.b32.xlu1 %v89_v40, %s473_s17  ;;  %v90_v43 = vsub.f32 %v72_v12, %v89_v40  ;;  %v94_v45 = vsub.f32 %v85_v39, %v89_v40 }
 0x251   :  { %v199_v42 = vsel %vm65_vm3, %v198_v41, -1e+30 }
 0x252   :  { %v203_v44 = vmax.f32 %v187_v17, %v199_v42  ;;  %v91_v47 = vmul.f32 1.442695, %v90_v43  ;;  %v95_v49 = vmul.f32 1.442695, %v94_v45 }
 0x254   :  { %v204_v46 = vsub.f32 %v187_v17, %v203_v44  ;;  %213 = vrot.lane.b32.xlu0 %v203_v44, %s472_s16  ;;  %v208_v48 = vsub.f32 %v199_v42, %v203_v44  ;;  %379 = vpow2.f32 %v91_v47 }
 0x255   :  { %381 = vpow2.f32 %v95_v49 }
 0x256   :  { %v205_v50 = vmul.f32 1.442695, %v204_v46  ;;  %v209_v51 = vmul.f32 1.442695, %v208_v48 }
 0x258   :  { %383 = vpow2.f32 %v205_v50 }
 0x259   :  { %385 = vpow2.f32 %v209_v51 }
 0x25e   :  { %v380_v52 = vpop.eup %379 }
 0x25f   :  { %v382_v53 = vpop.eup %381  ;;  %v93_v57 = vmul.f32 %v380_v52, %v81_v34 }
 0x262   :  { %v384_v55 = vpop.eup %383 }
 0x263   :  { %v386_v60 = vpop.eup %385  ;;  %v207_v63 = vmul.f32 %v384_v55, %v196_v37 }
 0x265   :  { %v87_v54 = vpop.permute.xlu1 %86 }
 0x266   :  { %v88_v56 = vsel %vm82_vm4, %v87_v54, 0.0 }
 0x267   :  { %v97_v58 = vmul.f32 %v382_v53, %v88_v56  ;;  %v201_v59 = vpop.permute.xlu0 %200 }
 0x268   :  { %v202_v61 = vsel %vm65_vm3, %v201_v59, 0.0 }
 0x269   :  { %v98_v62 = vadd.f32 %v97_v58, %v93_v57  ;;  %v211_v1 = vmul.f32 %v386_v60, %v202_v61 }
 0x26b   :  { %v212_v2 = vadd.f32 %v211_v1, %v207_v63  ;;  %103 = vrot.lane.b32.xlu1 %v98_v62, %s473_s17 }
 0x26d   :  { %216 = vrot.lane.b32.xlu0 %v212_v2, %s472_s16 }
 0x2c2   :  { %v101_v5 = vpop.permute.xlu1 %100 }
 0x2c3   :  { %v102_v6 = vsel %vm99_vm5, %v101_v5, -1e+30 }
 0x2c4   :  { %v106_v7 = vmax.f32 %v89_v40, %v102_v6 }
 0x2c6   :  { %v214_v8 = vpop.permute.xlu0 %213  ;;  %117 = vrot.lane.b32.xlu1 %v106_v7, %s475_s18  ;;  %v107_v12 = vsub.f32 %v89_v40, %v106_v7  ;;  %v111_v13 = vsub.f32 %v102_v6, %v106_v7 }
 0x2c7   :  { %v215_v10 = vsel %vm82_vm4, %v214_v8, -1e+30 }
 0x2c8   :  { %v219_v11 = vmax.f32 %v203_v44, %v215_v10  ;;  %v108_v15 = vmul.f32 1.442695, %v107_v12  ;;  %v112_v17 = vmul.f32 1.442695, %v111_v13 }
 0x2ca   :  { %229 = vrot.lane.b32.xlu0 %v219_v11, %s473_s17  ;;  %v220_v14 = vsub.f32 %v203_v44, %v219_v11  ;;  %v224_v16 = vsub.f32 %v215_v10, %v219_v11  ;;  %387 = vpow2.f32 %v108_v15 }
 0x2cb   :  { %389 = vpow2.f32 %v112_v17 }
 0x2cc   :  { %v221_v18 = vmul.f32 1.442695, %v220_v14  ;;  %v225_v19 = vmul.f32 1.442695, %v224_v16 }
 0x2ce   :  { %391 = vpow2.f32 %v221_v18 }
 0x2cf   :  { %393 = vpow2.f32 %v225_v19 }
 0x2d4   :  { %v388_v20 = vpop.eup %387 }
 0x2d5   :  { %v390_v21 = vpop.eup %389  ;;  %v110_v25 = vmul.f32 %v388_v20, %v98_v62 }
 0x2d8   :  { %v392_v23 = vpop.eup %391 }
 0x2d9   :  { %v394_v28 = vpop.eup %393  ;;  %v223_v31 = vmul.f32 %v392_v23, %v212_v2 }
 0x2dd   :  { %v104_v22 = vpop.permute.xlu1 %103 }
 0x2de   :  { %v105_v24 = vsel %vm99_vm5, %v104_v22, 0.0 }
 0x2df   :  { %v114_v26 = vmul.f32 %v390_v21, %v105_v24  ;;  %v217_v27 = vpop.permute.xlu0 %216 }
 0x2e0   :  { %v218_v29 = vsel %vm82_vm4, %v217_v27, 0.0 }
 0x2e1   :  { %v115_v30 = vadd.f32 %v114_v26, %v110_v25  ;;  %v227_v32 = vmul.f32 %v394_v28, %v218_v29 }
 0x2e3   :  { %v228_v33 = vadd.f32 %v227_v32, %v223_v31  ;;  %120 = vrot.lane.b32.xlu1 %v115_v30, %s475_s18 }
 0x2e5   :  { %232 = vrot.lane.b32.xlu0 %v228_v33, %s473_s17 }
 0x338   :  { %v118_v34 = vpop.permute.xlu1 %117 }
 0x339   :  { %v119_v35 = vsel %vm116_vm6, %v118_v34, -1e+30 }
 0x33a   :  { %v123_v36 = vmax.f32 %v106_v7, %v119_v35 }
 0x33c   :  { %v230_v37 = vpop.permute.xlu0 %229  ;;  %v133_v38 = vmax.f32 %v123_v36, -1e+30  ;;  %v124_v41 = vsub.f32 %v106_v7, %v123_v36  ;;  %v128_v42 = vsub.f32 %v119_v35, %v123_v36 }
 0x33d   :  { %v231_v39 = vsel %vm99_vm5, %v230_v37, -1e+30 }
 0x33e   :  { %v235_v40 = vmax.f32 %v219_v11, %v231_v39  ;;  %263 = vperm.xlu1 %349, %v133_v38   ;;  %v138_v44 = vsub.f32 -1e+30, %v133_v38  ;;  %v125_v45 = vmul.f32 1.442695, %v124_v41  ;;  %v129_v47 = vmul.f32 1.442695, %v128_v42 }
 0x33f   :  { %v134_v49 = vsub.f32 %v123_v36, %v133_v38  ;;  %v285_v42 = vadd.s32 128, %v499_v3 }
 0x340   :  { %245 = vrot.lane.b32.xlu0 %v235_v40, %s475_s18  ;;  %v236_v43 = vsub.f32 %v219_v11, %v235_v40  ;;  %v240_v46 = vsub.f32 %v231_v39, %v235_v40  ;;  %v139_v50 = vmul.f32 1.442695, %v138_v44  ;;  %395 = vpow2.f32 %v125_v45 }
 0x341   :  { %397 = vpow2.f32 %v129_v47  ;;  %v135_v52 = vmul.f32 1.442695, %v134_v49  ;;  %vm287_vm7 = vcmp.lt.s32.totalorder %v285_v42, 200 }
 0x342   :  { %v237_v48 = vmul.f32 1.442695, %v236_v43  ;;  %v241_v51 = vmul.f32 1.442695, %v240_v46 }
 0x344   :  { %399 = vpow2.f32 %v237_v48 }
 0x345   :  { %401 = vpow2.f32 %v139_v50 }
 0x346   :  { %403 = vpow2.f32 %v241_v51 }
 0x347   :  { %405 = vpow2.f32 %v135_v52 }
 0x34a   :  { %v396_v53 = vpop.eup %395 }
 0x34b   :  { %v398_v54 = vpop.eup %397  ;;  %v127_v59 = vmul.f32 %v396_v53, %v115_v30 }
 0x34e   :  { %v400_v56 = vpop.eup %399 }
 0x34f   :  { %v402_v58 = vpop.eup %401  ;;  %v239_v2 = vmul.f32 %v400_v56, %v228_v33 }
 0x350   :  { %v404_v62 = vpop.eup %403  ;;  %v141_v8 = vmul.f32 0.0, %v402_v58 }
 0x351   :  { %v406_v5 = vpop.eup %405 }
 0x355   :  { %v121_v55 = vpop.permute.xlu1 %120 }
 0x356   :  { %v122_v57 = vsel %vm116_vm6, %v121_v55, 0.0 }
 0x357   :  { %v131_v60 = vmul.f32 %v398_v54, %v122_v57  ;;  %v233_v61 = vpop.permute.xlu0 %232 }
 0x358   :  { %v234_v63 = vsel %vm99_vm5, %v233_v61, 0.0 }
 0x359   :  { %v132_v1 = vadd.f32 %v131_v60, %v127_v59  ;;  %v243_v4 = vmul.f32 %v404_v62, %v234_v63 }
 0x35b   :  { %v137_v6 = vmul.f32 %v406_v5, %v132_v1  ;;  %v244_v7 = vadd.f32 %v243_v4, %v239_v2 }
 0x35d   :  { %248 = vrot.lane.b32.xlu0 %v244_v7, %s475_s18  ;;  %v142_v10 = vadd.f32 %v141_v8, %v137_v6 }
 0x35f   :  { %268 = vperm.xlu1 %349, %v142_v10   ;;  %407 = vlog2.f32 %v142_v10 }
 0x369   :  { %v408_v11 = vpop.eup %407 }
 0x36a   :  { %v144_v12 = vmul.f32 0.6931472, %v408_v11 }
 0x36c   :  { %v145_v13 = vadd.f32 %v144_v12, %v133_v38 }
 0x36e   :  { %v146_v14 = vsub.f32 %v145_v13, %v496_v0 }
 0x370   :  { %v149_v15 = vsel %vm15_vm0, %v146_v14, 0.0 }
 0x371   :  { %150 = vst [vmem:[#allocation2] sm:$0x1] %v149_v15 }
 0x3b2   :  { %v246_v16 = vpop.permute.xlu0 %245 }
 0x3b3   :  { %v247_v17 = vsel %vm116_vm6, %v246_v16, -1e+30 }
 0x3b4   :  { %v251_v18 = vmax.f32 %v235_v40, %v247_v17 }
 0x3b6   :  { %v252_v19 = vsub.f32 %v235_v40, %v251_v18  ;;  %v256_v20 = vsub.f32 %v247_v17, %v251_v18 }
 0x3b8   :  { %v253_v22 = vmul.f32 1.442695, %v252_v19  ;;  %v257_v24 = vmul.f32 1.442695, %v256_v20 }
 0x3ba   :  { %409 = vpow2.f32 %v253_v22 }
 0x3bb   :  { %411 = vpow2.f32 %v257_v24 }
 0x3bd   :  { %v264_v21 = vpop.permute.xlu1 %263 }
 0x3be   :  { %v271_v23 = vmax.f32 %v251_v18, %v264_v21 }
 0x3c0   :  { %v272_v25 = vsub.f32 %v251_v18, %v271_v23  ;;  %v276_v26 = vsub.f32 %v264_v21, %v271_v23 }
 0x3c2   :  { %v273_v0 = vmul.f32 1.442695, %v272_v25  ;;  %v277_v27 = vmul.f32 1.442695, %v276_v26 }
 0x3c4   :  { %413 = vpow2.f32 %v273_v0  ;;  %v410_v30 = vpop.eup %409 }
 0x3c5   :  { %415 = vpow2.f32 %v277_v27  ;;  %v412_v31 = vpop.eup %411  ;;  %v255_v33 = vmul.f32 %v410_v30, %v244_v7 }
 0x3ce   :  { %v414_v35 = vpop.eup %413 }
 0x3cf   :  { %v249_v28 = vpop.permute.xlu0 %248  ;;  %v416_v36 = vpop.eup %415 }
 0x3d0   :  { %v250_v29 = vsel %vm116_vm6, %v249_v28, 0.0 }
 0x3d1   :  { %v259_v32 = vmul.f32 %v412_v31, %v250_v29 }
 0x3d3   :  { %v260_v34 = vadd.f32 %v259_v32, %v255_v33 }
 0x3d5   :  { %v275_v38 = vmul.f32 %v414_v35, %v260_v34 }
 0x3de   :  { %v269_v37 = vpop.permute.xlu1 %268 }
 0x3df   :  { %v279_v39 = vmul.f32 %v416_v36, %v269_v37 }
 0x3e1   :  { %v280_v40 = vadd.f32 %v279_v39, %v275_v38 }
 0x3e3   :  { %417 = vlog2.f32 %v280_v40 }
 0x3ed   :  { %v418_v41 = vpop.eup %417 }
 0x3ee   :  { %v282_v43 = vmul.f32 0.6931472, %v418_v41 }
 0x3f0   :  { %v283_v44 = vadd.f32 %v282_v43, %v271_v23 }
 0x3f2   :  { %v284_v45 = vsub.f32 %v283_v44, %v510_v9 }
 0x3f4   :  { %v289_v46 = vsel %vm287_vm7, %v284_v45, 0.0 }
 0x3f5   :  { %v291_v47 = vadd.f32 %v289_v46, %v149_v15  ;;  %290 = vst [vmem:[#allocation2 + $0x1] sm:$0x1] %v289_v46 }
 0x3f7   :  { %v293_v48 = vsel %vm292_vm8, %v291_v47, 0.0 }
 0x3f8   :  { %294 = vadd.xlane.f32.xlu1 %v293_v48 }
 0x3f9   :  { %430 = shalt.err (!%p427_p4)
}
 0x3fa   :  { %s431_s24 = scalar_lea.hbm %s626_s1, 32 }
 0x3fb   :  { %p432_p5 = scmp.ne.s32.totalorder %s626_s1, %s431_s24  ;;  %p435_p6 = scmp.lt.u32.totalorder %s431_s24, %s626_s1 }
 0x3fd   :  { %p437_p7 = pnand %p435_p6, %p432_p5 }
 0x3ff   :  { %440 = shalt.err (!%p437_p7)
}
 0x400   :  { %317 = dma.vmem_to_hbm [thread:$0]  %s315_s20, 32, %s626_s1, [#allocation3]   ;;  %vm306_vm9 = vcmask 0  }
 0x401   :  { %s477_s3 = smov [#allocation4]  }
 0x402   :  { %s324_s4 = sshll.u32 %s477_s3, 4  ;;  %s325_s4 = int_to_ptr.vmem [resolvable:$true] %s324_s4 }
 0x403   :  { %s441_s6 = scalar_lea.vmem %s325_s4, 16  ;;  %s445_s7 = scalar_lea.vmem %s325_s4, 32 }
 0x404   :  { %p442_p8 = scmp.ne.s32.totalorder %s325_s4, %s441_s6  ;;  %p446_p9 = scmp.lt.s32.totalorder %s325_s4, %s325_s4 }
 0x405   :  { %p447_p10 = scmp.lt.s32.totalorder %s445_s7, %s441_s6 }
 0x407   :  { %p448_p11 = por %p447_p10, %p446_p9 }
 0x409   :  { %p449_p12 = pnand %p448_p11, %p442_p8 }
 0x485   :  { %v295_v3 = vpop.xlane.xlu1 %294 }
 0x486   :  { %v296_v9 = vrot.slane %v295_v3, 4 }
 0x488   :  { %v297_v49 = vadd.f32 %v296_v9, %v295_v3 }
 0x48a   :  { %v298_v50 = vrot.slane %v297_v49, 2 }
 0x48c   :  { %v299_v51 = vadd.f32 %v298_v50, %v297_v49 }
 0x48e   :  { %v300_v52 = vrot.slane %v299_v51, 1 }
 0x490   :  { %v301_v53 = vadd.f32 %v300_v52, %v299_v51 }
 0x492   :  { %336 = vpush %v301_v53 }
 0x4c3   :  { %s337_s5 = spop %336 }
 0x4c4   :  { %v303_v54 = vstv %s337_s5 }
 0x4c5   :  { %v305_v55 = vmul.f32 0.005, %v303_v54 }
 0x4c7   :  { %307 = vst.msk [vmem:[#allocation4] sm:$0x1] %vm306_vm9, %v305_v55 }
 0x4c8   :  { %452 = shalt.err (!%p449_p12)
}
 0x4c9   :  { %s453_s9 = scalar_lea.hbm %s627_s2, 16 }
 0x4ca   :  { %p454_p13 = scmp.ne.s32.totalorder %s627_s2, %s453_s9  ;;  %p457_p0 = scmp.lt.u32.totalorder %s453_s9, %s627_s2 }
 0x4cc   :  { %p459_p1 = pnand %p457_p0, %p454_p13 }
 0x4ce   :  { %462 = shalt.err (!%p459_p1)
}
 0x4cf   :  { %327 = dma.vmem_to_hbm [thread:$0]  %s325_s4, 16, %s627_s2, [#allocation5]  }
 0x4d0   :  { %463 = dma.done.wait [#allocation3], 32  }
 0x4d1   :  { %464 = vsyncadd [#allocation3], 4294967264 }
 0x4d2   :  { %465 = dma.done.wait [#allocation5], 16  }
 0x4d3   :  { %466 = vsyncadd [#allocation5], 4294967280 }
 0x4d4   :  { %334 = vsyncpa [#allocation3], 1 }
 0x4d5   :  { %335 = vsyncpa [#allocation5], 1 }

</bundles_post_ra>
